<compile_context>
chip_gen: v6e
topology: v6e:2x2x1
jax: 0.10.0
libtpu: 0.0.40
codegen_flags: <defaults>
</compile_context>

<pallas_src>
import jax
import jax.numpy as jnp
from jax.experimental import pallas as pl
from jax.experimental.pallas import tpu as pltpu

DIMS = [20, 40, 20, 10, 5, 3]


def mlp_kernel(x_ref,
               w1_ref, b1_ref,
               w2_ref, b2_ref,
               w3_ref, b3_ref,
               w4_ref, b4_ref,
               w5_ref, b5_ref,
               o_ref):
    # Layer 1 folds the layout change into the matmul: contract the last dim
    # of both operands -> (40, TB), batch lands on the lane axis with no
    # wrapper-side HBM transpose of x.
    h = jax.lax.dot_general(
        w1_ref[...], x_ref[...],
        dimension_numbers=(((1,), (1,)), ((), ())),
        preferred_element_type=jnp.float32)
    h = jnp.maximum(h + b1_ref[...], 0.0).astype(jnp.bfloat16)

    def dense(h, w_ref, b_ref, relu):
        # bf16 operands, f32 accumulation; bias/ReLU stay f32.
        y = jnp.dot(w_ref[...], h, preferred_element_type=jnp.float32)
        y = y + b_ref[...]                      # (out, 1) broadcasts over lanes
        if relu:
            y = jnp.maximum(y, 0.0).astype(jnp.bfloat16)
        return y

    h = dense(h, w2_ref, b2_ref, relu=True)
    h = dense(h, w3_ref, b3_ref, relu=True)
    h = dense(h, w4_ref, b4_ref, relu=True)
    h = dense(h, w5_ref, b5_ref, relu=False)

    o_ref[...] = h.astype(o_ref.dtype)          # (3, TB), lane-dense store


def mlp_forward(x, params, *, tb=8192):
    """x: (B, 20); params: [(W, b)] with W:(out, in) f32, b:(out, 1) f32."""
    B, fin = x.shape
    assert fin == DIMS[0]

    # ---- batch tiling -------------------------------------------------------
    B128 = pl.cdiv(B, 128) * 128                       # lane-aligned batch
    tb_cap = max(128, (int(tb) // 128) * 128)
    # >= 2 grid steps when the batch allows (v7x: both TCs via "parallel"),
    # single step for tiny batches; tiles are 128-multiples on the lane axis.
    n_tiles = max(pl.cdiv(B128, tb_cap), 2 if B128 >= 256 else 1)
    TB = pl.cdiv(pl.cdiv(B128, n_tiles), 128) * 128
    Bp = n_tiles * TB

    xb = x.astype(jnp.bfloat16)                        # halve x HBM traffic
    if Bp != B:                                        # remainder rows only
        xb = jnp.pad(xb, ((0, Bp - B), (0, 0)))

    flat = []
    for w, b in params:
        flat.extend([w.astype(jnp.bfloat16),           # bf16 MXU operands
                     b.astype(jnp.float32)])           # f32 bias, (out, 1)

    # Weights/biases: full blocks, constant index_map -> fetched once, resident.
    resident = lambda a: pl.BlockSpec(a.shape, lambda i: (0, 0))

    flops = 2 * Bp * sum(DIMS[i] * DIMS[i + 1] for i in range(len(DIMS) - 1))
    bytes_accessed = (xb.size * xb.dtype.itemsize
                      + Bp * DIMS[-1] * 4
                      + sum(int(a.size) * a.dtype.itemsize for a in flat))

    out_t = pl.pallas_call(
        mlp_kernel,
        out_shape=jax.ShapeDtypeStruct((DIMS[-1], Bp), jnp.float32),
        grid_spec=pl.GridSpec(
            grid=(n_tiles,),
            in_specs=[pl.BlockSpec((TB, DIMS[0]), lambda i: (i, 0))]   # streamed x
                     + [resident(a) for a in flat],                    # resident params
            out_specs=pl.BlockSpec((DIMS[-1], TB), lambda i: (0, i)),  # lane-dense out
        ),
        compiler_params=pltpu.CompilerParams(
            dimension_semantics=("parallel",),          # v7x: shard batch over 2 TCs
            vmem_limit_bytes=32 * 1024 * 1024,          # safe on v5e/v6e/v7x
        ),
        cost_estimate=pl.CostEstimate(
            flops=flops, transcendentals=0, bytes_accessed=bytes_accessed),
    )(xb, *flat)

    # Tiny (3, B) slab -> PyTorch's (B, 3); negligible vs. the x stream.
    return out_t[:, :B].T


def init_params(key):
    """torch.nn.Linear default init: U(-1/sqrt(in), 1/sqrt(in)); W:(out,in), b:(out,1)."""
    params = []
    for i in range(len(DIMS) - 1):
        fan_in, fan_out = DIMS[i], DIMS[i + 1]
        key, kw, kb = jax.random.split(key, 3)
        bound = 1.0 / (fan_in ** 0.5)
        w = jax.random.uniform(kw, (fan_out, fan_in), jnp.float32, -bound, bound)
        b = jax.random.uniform(kb, (fan_out, 1), jnp.float32, -bound, bound)
        params.append((w, b))
    return params


def reference_forward(x, params):
    h = x.astype(jnp.float32)
    for i, (w, b) in enumerate(params):
        h = jnp.dot(h, w.T, precision=jax.lax.Precision.HIGHEST) + b[:, 0]
        if i < len(params) - 1:
            h = jnp.maximum(h, 0.0)
    return h


if __name__ == "__main__":
    key = jax.random.PRNGKey(0)
    key, kx = jax.random.split(key)
    B = 256
    # bf16 at the producer: halves the HBM-dominant x traffic.
    x = jax.random.normal(kx, (B, 20), jnp.float32).astype(jnp.bfloat16)

    params = init_params(key)

    # Default tb with B=256 -> TB=128, 2 grid steps: exercises the pipelined
    # batch tiling and the megacore-friendly >=2-tile split.
    out = mlp_forward(x, params)
    out = jax.block_until_ready(out)

    ref = reference_forward(x, params)
    assert out.shape == (B, 3), out.shape
    max_err = jnp.max(jnp.abs(out - ref))
    assert jnp.allclose(out, ref, atol=1e-2, rtol=1e-2), f"max abs err {max_err}"

    print("KERNEL_OK")
</pallas_src>

<mosaic_0001>
module attributes {stable_mosaic.version = 11 : i64} {
  func.func @mlp_kernel(%arg0: i32, %arg1: memref<128x20xbf16, #tpu.memory_space<vmem>>, %arg2: memref<40x20xbf16, #tpu.memory_space<vmem>>, %arg3: memref<40x1xf32, #tpu.memory_space<vmem>>, %arg4: memref<20x40xbf16, #tpu.memory_space<vmem>>, %arg5: memref<20x1xf32, #tpu.memory_space<vmem>>, %arg6: memref<10x20xbf16, #tpu.memory_space<vmem>>, %arg7: memref<10x1xf32, #tpu.memory_space<vmem>>, %arg8: memref<5x10xbf16, #tpu.memory_space<vmem>>, %arg9: memref<5x1xf32, #tpu.memory_space<vmem>>, %arg10: memref<3x5xbf16, #tpu.memory_space<vmem>>, %arg11: memref<3x1xf32, #tpu.memory_space<vmem>>, %arg12: memref<3x128xf32, #tpu.memory_space<vmem>>) attributes {dimension_semantics = [#tpu.dimension_semantics<parallel>], iteration_bounds = array<i64: 2>, scalar_prefetch = 0 : i64, scratch_operands = 0 : i64, tpu.core_type = #tpu.core_type<tc>, window_params = [{transform_indices = @transform_0, window_bounds = array<i64: 128, 20>}, {pipeline_mode = #tpu.pipeline_mode<synchronous>, transform_indices = @transform_1, window_bounds = array<i64: 40, 20>}, {pipeline_mode = #tpu.pipeline_mode<synchronous>, transform_indices = @transform_2, window_bounds = array<i64: 40, 1>}, {pipeline_mode = #tpu.pipeline_mode<synchronous>, transform_indices = @transform_3, window_bounds = array<i64: 20, 40>}, {pipeline_mode = #tpu.pipeline_mode<synchronous>, transform_indices = @transform_4, window_bounds = array<i64: 20, 1>}, {pipeline_mode = #tpu.pipeline_mode<synchronous>, transform_indices = @transform_5, window_bounds = array<i64: 10, 20>}, {pipeline_mode = #tpu.pipeline_mode<synchronous>, transform_indices = @transform_6, window_bounds = array<i64: 10, 1>}, {pipeline_mode = #tpu.pipeline_mode<synchronous>, transform_indices = @transform_7, window_bounds = array<i64: 5, 10>}, {pipeline_mode = #tpu.pipeline_mode<synchronous>, transform_indices = @transform_8, window_bounds = array<i64: 5, 1>}, {pipeline_mode = #tpu.pipeline_mode<synchronous>, transform_indices = @transform_9, window_bounds = array<i64: 3, 5>}, {pipeline_mode = #tpu.pipeline_mode<synchronous>, transform_indices = @transform_10, window_bounds = array<i64: 3, 1>}, {transform_indices = @transform_11, window_bounds = array<i64: 3, 128>}]} {
    %c0 = arith.constant 0 : index
    %c0_0 = arith.constant 0 : index
    %0 = vector.load %arg2[%c0, %c0_0] : memref<40x20xbf16, #tpu.memory_space<vmem>>, vector<40x20xbf16>
    %c0_1 = arith.constant 0 : index
    %c0_2 = arith.constant 0 : index
    %1 = vector.load %arg1[%c0_1, %c0_2] : memref<128x20xbf16, #tpu.memory_space<vmem>>, vector<128x20xbf16>
    %cst = arith.constant dense<0.000000e+00> : vector<40x128xf32>
    %2 = tpu.matmul %0, %1, %cst {dimension_numbers = #tpu.dot_dimension_numbers<[1], [1], [0], [0], [0, 0, 1, 0], [], []>} : vector<40x20xbf16>, vector<128x20xbf16>, vector<40x128xf32> -> vector<40x128xf32>
    %c0_3 = arith.constant 0 : index
    %c0_4 = arith.constant 0 : index
    %3 = vector.load %arg3[%c0_3, %c0_4] : memref<40x1xf32, #tpu.memory_space<vmem>>, vector<40x1xf32>
    %4 = vector.broadcast %3 : vector<40x1xf32> to vector<40x128xf32>
    %5 = arith.addf %2, %4 : vector<40x128xf32>
    %cst_5 = arith.constant 0.000000e+00 : f32
    %6 = vector.broadcast %cst_5 : f32 to vector<40x128xf32>
    %7 = arith.maximumf %5, %6 : vector<40x128xf32>
    %8 = arith.truncf %7 : vector<40x128xf32> to vector<40x128xbf16>
    %c0_6 = arith.constant 0 : index
    %c0_7 = arith.constant 0 : index
    %9 = vector.load %arg4[%c0_6, %c0_7] : memref<20x40xbf16, #tpu.memory_space<vmem>>, vector<20x40xbf16>
    %cst_8 = arith.constant dense<0.000000e+00> : vector<20x128xf32>
    %10 = tpu.matmul %9, %8, %cst_8 {dimension_numbers = #tpu.dot_dimension_numbers<[1], [0], [0], [1], [0, 0, 1, 1], [], []>} : vector<20x40xbf16>, vector<40x128xbf16>, vector<20x128xf32> -> vector<20x128xf32>
    %c0_9 = arith.constant 0 : index
    %c0_10 = arith.constant 0 : index
    %11 = vector.load %arg5[%c0_9, %c0_10] : memref<20x1xf32, #tpu.memory_space<vmem>>, vector<20x1xf32>
    %12 = vector.broadcast %11 : vector<20x1xf32> to vector<20x128xf32>
    %13 = arith.addf %10, %12 : vector<20x128xf32>
    %cst_11 = arith.constant 0.000000e+00 : f32
    %14 = vector.broadcast %cst_11 : f32 to vector<20x128xf32>
    %15 = arith.maximumf %13, %14 : vector<20x128xf32>
    %16 = arith.truncf %15 : vector<20x128xf32> to vector<20x128xbf16>
    %c0_12 = arith.constant 0 : index
    %c0_13 = arith.constant 0 : index
    %17 = vector.load %arg6[%c0_12, %c0_13] : memref<10x20xbf16, #tpu.memory_space<vmem>>, vector<10x20xbf16>
    %cst_14 = arith.constant dense<0.000000e+00> : vector<10x128xf32>
    %18 = tpu.matmul %17, %16, %cst_14 {dimension_numbers = #tpu.dot_dimension_numbers<[1], [0], [0], [1], [0, 0, 1, 1], [], []>} : vector<10x20xbf16>, vector<20x128xbf16>, vector<10x128xf32> -> vector<10x128xf32>
    %c0_15 = arith.constant 0 : index
    %c0_16 = arith.constant 0 : index
    %19 = vector.load %arg7[%c0_15, %c0_16] : memref<10x1xf32, #tpu.memory_space<vmem>>, vector<10x1xf32>
    %20 = vector.broadcast %19 : vector<10x1xf32> to vector<10x128xf32>
    %21 = arith.addf %18, %20 : vector<10x128xf32>
    %cst_17 = arith.constant 0.000000e+00 : f32
    %22 = vector.broadcast %cst_17 : f32 to vector<10x128xf32>
    %23 = arith.maximumf %21, %22 : vector<10x128xf32>
    %24 = arith.truncf %23 : vector<10x128xf32> to vector<10x128xbf16>
    %c0_18 = arith.constant 0 : index
    %c0_19 = arith.constant 0 : index
    %25 = vector.load %arg8[%c0_18, %c0_19] : memref<5x10xbf16, #tpu.memory_space<vmem>>, vector<5x10xbf16>
    %cst_20 = arith.constant dense<0.000000e+00> : vector<5x128xf32>
    %26 = tpu.matmul %25, %24, %cst_20 {dimension_numbers = #tpu.dot_dimension_numbers<[1], [0], [0], [1], [0, 0, 1, 1], [], []>} : vector<5x10xbf16>, vector<10x128xbf16>, vector<5x128xf32> -> vector<5x128xf32>
    %c0_21 = arith.constant 0 : index
    %c0_22 = arith.constant 0 : index
    %27 = vector.load %arg9[%c0_21, %c0_22] : memref<5x1xf32, #tpu.memory_space<vmem>>, vector<5x1xf32>
    %28 = vector.broadcast %27 : vector<5x1xf32> to vector<5x128xf32>
    %29 = arith.addf %26, %28 : vector<5x128xf32>
    %cst_23 = arith.constant 0.000000e+00 : f32
    %30 = vector.broadcast %cst_23 : f32 to vector<5x128xf32>
    %31 = arith.maximumf %29, %30 : vector<5x128xf32>
    %32 = arith.truncf %31 : vector<5x128xf32> to vector<5x128xbf16>
    %c0_24 = arith.constant 0 : index
    %c0_25 = arith.constant 0 : index
    %33 = vector.load %arg10[%c0_24, %c0_25] : memref<3x5xbf16, #tpu.memory_space<vmem>>, vector<3x5xbf16>
    %cst_26 = arith.constant dense<0.000000e+00> : vector<3x128xf32>
    %34 = tpu.matmul %33, %32, %cst_26 {dimension_numbers = #tpu.dot_dimension_numbers<[1], [0], [0], [1], [0, 0, 1, 1], [], []>} : vector<3x5xbf16>, vector<5x128xbf16>, vector<3x128xf32> -> vector<3x128xf32>
    %c0_27 = arith.constant 0 : index
    %c0_28 = arith.constant 0 : index
    %35 = vector.load %arg11[%c0_27, %c0_28] : memref<3x1xf32, #tpu.memory_space<vmem>>, vector<3x1xf32>
    %36 = vector.broadcast %35 : vector<3x1xf32> to vector<3x128xf32>
    %37 = arith.addf %34, %36 : vector<3x128xf32>
    %c0_29 = arith.constant 0 : index
    %c0_30 = arith.constant 0 : index
    %38 = vector.load %arg12[%c0_29, %c0_30] : memref<3x128xf32, #tpu.memory_space<vmem>>, vector<3x128xf32>
    tpu.vector_store %arg12[%c0_29, %c0_30], %37 {strides = array<i32>} : memref<3x128xf32, #tpu.memory_space<vmem>>, vector<3x128xf32>,
    return
  }
  func.func @transform_0(%arg0: i32) -> (i32, i32) {
    %c0_i32 = arith.constant 0 : i32
    %c0_i32_0 = arith.constant 0 : i32
    return %arg0, %c0_i32 : i32, i32
  }
  func.func @transform_1(%arg0: i32) -> (i32, i32) {
    %c0_i32 = arith.constant 0 : i32
    %c0_i32_0 = arith.constant 0 : i32
    %c0_i32_1 = arith.constant 0 : i32
    return %c0_i32, %c0_i32_0 : i32, i32
  }
  func.func @transform_2(%arg0: i32) -> (i32, i32) {
    %c0_i32 = arith.constant 0 : i32
    %c0_i32_0 = arith.constant 0 : i32
    %c0_i32_1 = arith.constant 0 : i32
    return %c0_i32, %c0_i32_0 : i32, i32
  }
  func.func @transform_3(%arg0: i32) -> (i32, i32) {
    %c0_i32 = arith.constant 0 : i32
    %c0_i32_0 = arith.constant 0 : i32
    %c0_i32_1 = arith.constant 0 : i32
    return %c0_i32, %c0_i32_0 : i32, i32
  }
  func.func @transform_4(%arg0: i32) -> (i32, i32) {
    %c0_i32 = arith.constant 0 : i32
    %c0_i32_0 = arith.constant 0 : i32
    %c0_i32_1 = arith.constant 0 : i32
    return %c0_i32, %c0_i32_0 : i32, i32
  }
  func.func @transform_5(%arg0: i32) -> (i32, i32) {
    %c0_i32 = arith.constant 0 : i32
    %c0_i32_0 = arith.constant 0 : i32
    %c0_i32_1 = arith.constant 0 : i32
    return %c0_i32, %c0_i32_0 : i32, i32
  }
  func.func @transform_6(%arg0: i32) -> (i32, i32) {
    %c0_i32 = arith.constant 0 : i32
    %c0_i32_0 = arith.constant 0 : i32
    %c0_i32_1 = arith.constant 0 : i32
    return %c0_i32, %c0_i32_0 : i32, i32
  }
  func.func @transform_7(%arg0: i32) -> (i32, i32) {
    %c0_i32 = arith.constant 0 : i32
    %c0_i32_0 = arith.constant 0 : i32
    %c0_i32_1 = arith.constant 0 : i32
    return %c0_i32, %c0_i32_0 : i32, i32
  }
  func.func @transform_8(%arg0: i32) -> (i32, i32) {
    %c0_i32 = arith.constant 0 : i32
    %c0_i32_0 = arith.constant 0 : i32
    %c0_i32_1 = arith.constant 0 : i32
    return %c0_i32, %c0_i32_0 : i32, i32
  }
  func.func @transform_9(%arg0: i32) -> (i32, i32) {
    %c0_i32 = arith.constant 0 : i32
    %c0_i32_0 = arith.constant 0 : i32
    %c0_i32_1 = arith.constant 0 : i32
    return %c0_i32, %c0_i32_0 : i32, i32
  }
  func.func @transform_10(%arg0: i32) -> (i32, i32) {
    %c0_i32 = arith.constant 0 : i32
    %c0_i32_0 = arith.constant 0 : i32
    %c0_i32_1 = arith.constant 0 : i32
    return %c0_i32, %c0_i32_0 : i32, i32
  }
  func.func @transform_11(%arg0: i32) -> (i32, i32) {
    %c0_i32 = arith.constant 0 : i32
    %c0_i32_0 = arith.constant 0 : i32
    return %c0_i32, %arg0 : i32, i32
  }
}

</mosaic_0001>

<bundles_post_ra>
// kernel: tpu_custom_call.1
= control target key start
LH: loop header
LB: loop body
LE: loop exit
PB: predicated region body
PF: predicated region fallthrough
CT: control target
= control target key end

     0   :  { %16 = vsyncpa [#allocation3], 0  ;;  %s1450_s0 = inlined_call_operand.vmem [shape: bf16[256,20], index: 0, kind: input, shape index: {}]   ;;  %s1451_s1 = inlined_call_operand.vmem [shape: bf16[40,20], index: 1, kind: input, shape index: {}]   ;;  %s1452_s2 = inlined_call_operand.vmem [shape: f32[40,1], index: 2, kind: input, shape index: {}]   ;;  %s1453_s3 = inlined_call_operand.vmem [shape: bf16[20,40], index: 3, kind: input, shape index: {}]   ;;  %s1454_s4 = inlined_call_operand.vmem [shape: f32[20,1], index: 4, kind: input, shape index: {}]   ;;  %s1455_s5 = inlined_call_operand.vmem [shape: bf16[10,20], index: 5, kind: input, shape index: {}]   ;;  %s1456_s6 = inlined_call_operand.vmem [shape: f32[10,1], index: 6, kind: input, shape index: {}]   ;;  %s1457_s7 = inlined_call_operand.vmem [shape: bf16[5,10], index: 7, kind: input, shape index: {}]   ;;  %s1458_s8 = inlined_call_operand.vmem [shape: f32[5,1], index: 8, kind: input, shape index: {}]   ;;  %s1459_s9 = inlined_call_operand.vmem [shape: bf16[3,5], index: 9, kind: input, shape index: {}]   ;;  %s1460_s10 = inlined_call_operand.vmem [shape: f32[3,1], index: 10, kind: input, shape index: {}]   ;;  %s1461_s11 = inlined_call_operand.hbm [shape: f32[3,256], index: 11, kind: output, shape index: {}]  }
   0x1   :  { %18 = vsyncpa [#allocation3 + $0x1], 0  ;;  %s1242_s17 = smov 0   ;;  %s1244_s18 = smov 0  }
   0x2   :  { %s1246_s19 = smov 0   ;;  %s1248_s20 = smov 0  }
   0x3 LB: > { %1463 = sst [smem:[#allocation5_spill]] %s1171_s19  ;;  %s1263_s21 = sadd.s32 4294967295, %s1175_s20   ;;  %s1175_s20 = sphi %s1248_s20, %s1471_s20   ;;  %s1171_s19 = sphi %s1246_s19, %s1468_s19   ;;  %s1167_s18 = sphi %s1244_s18, %s1470_s18   ;;  %s1163_s17 = sphi %s1242_s17, %s1469_s17  }
   0x4   : > { %s941_s22 = sadd.s32 4294967294, %s1175_s20   ;;  %s1267_s23 = sadd.s32 1, %s1175_s20  }
   0x5   : > { %s267_s24 = sadd.s32 1, %s1171_s19  ;;  %s264_s25 = ssub.s32 %s1175_s20, %s1267_s23 }
   0x6   : > { %p277_p0 = scmp.ne.s32.totalorder %s1171_s19, %s1167_s18  ;;  %p265_p1 = scmp.eq.s32.totalorder %s264_s25, 0 }
   0x7   : > { %p278_p2 = scmp.eq.s32.totalorder %s1263_s21, 1  ;;  %p283_p3 = scmp.ne.s32.totalorder %s1167_s18, %s1163_s17 }
   0x8   : > { %p284_p4 = scmp.eq.s32.totalorder %s941_s22, 1  ;;  %p944_p7 = scmp.ge.s32.totalorder %s1175_s20, 1 }
   0x9   : > { %s1278_s26 = scalar_select %p265_p1, %s1171_s19, %s267_s24  }
   0xa   : > { %p1280_p5 = por %p278_p2, %p277_p0  ;;  %p1284_p6 = por %p284_p4, %p283_p3 }
   0xb   : > { %1464 = sst [smem:[#allocation6_spill]] %s1278_s26  ;;  %p341_p8 = scmp.lt.s32.totalorder %s1175_s20, 3 }
   0xd   : > { %p342_p9 = pnand %p944_p7, %p341_p8 }
   0xe   : > { %s946_s29 = sshll.u32 (!%p342_p9), %s1263_s21, 4  ;;  %s971_s25 = sshll.u32 (!%p342_p9), %s1263_s21, 6 }
   0xf   : > { %345 = sbr.rel (%p342_p9) target bundleno = 1143 (0x477), region = 64  ;;  %p382_p10 = scmp.lt.s32.totalorder (!%p342_p9), %s946_s29, 31 }
  0x10   : > { %s1409_s19 = scalar_lea.hbm (!%p342_p9), %s1461_s11, %s971_s25 }
  0x14   : > { %v1177_v0 = vmov 0.0   ;;  %vm1178_vm0 = vmmov 0   ;;  %s1473_s29 = smov (!%p382_p10, %s946_s29), 31  ;;  %v1179_v1 = vmov 0   ;;  %v413_v2 = vld [vmem:[%s1452_s2 + $0x20] sm:$0xff]  ;;  %v412_v3 = vld [vmem:[%s1452_s2 + $0x18] sm:$0xff] }
  0x15   : > { %997 = vmatprep.subr.bf16.mxu0 %v1177_v0  ;;  %1013 = vmatprep.mubr.msk.bf16.mxu0 %vm1178_vm0, %v1177_v0  ;;  %s947_s15 = sshll.u32 %s1473_s29, 2  ;;  %v411_v4 = vld [vmem:[%s1452_s2 + $0x10] sm:$0xff]  ;;  %v409_v5 = vld [vmem:[%s1452_s2] sm:$0xff]  ;;  %vm492_vm1 = vcmask 162816   ;;  %v410_v9 = vld [vmem:[%s1452_s2 + $0x8] sm:$0xff]  ;;  %vm619_vm2 = vcmask 326656  }
  0x16   : > { %1100 = vset.pattern.permute.xlu1 %v1179_v1  ;;  %1099 = vset.pattern.permute.xlu0 %v1179_v1  ;;  %s1309_s30 = scalar_lea.vmem %s1450_s0, %s947_s15  ;;  %v595_v7 = vld [vmem:[%s1454_s4 + $0x10] sm:$0xf]  ;;  %v593_v11 = vld [vmem:[%s1454_s4] sm:$0xff]  ;;  %v594_v12 = vld [vmem:[%s1454_s4 + $0x8] sm:$0xff]  ;;  %vm626_vm3 = vcmask 1043456   ;;  %vm705_vm4 = vcmask 1041408  }
  0x17   : > { %436 = vperm.xlu0 %1099, %v413_v2   ;;  %431 = vperm.xlu1 %1100, %v412_v3   ;;  %v1101_v6 = vld [vmem:[%s1309_s30 + $0x38] sm:$0xff]   ;;  %v1102_v10 = vld [vmem:[%s1309_s30 + $0x30] sm:$0xff]   ;;  %v685_v14 = vld [vmem:[%s1456_s6] sm:$0xff]  ;;  %vm764_vm5 = vcmask 1044480   ;;  %vm760_vm6 = vcmask 80896   ;;  %vm821_vm7 = vcmask 1042432  }
  0x18   : > { %v524_v8 = vsel %vm492_vm1, %v1101_v6, 0  ;;  %v521_v13 = vsel %vm492_vm1, %v1102_v10, 0  ;;  %v686_v15 = vld [vmem:[%s1456_s6 + $0x8] sm:$0x3]  ;;  %v754_v17 = vld [vmem:[%s1458_s8] sm:$0x1f] }
  0x19   : > { %998 = vmatpush3.bf16.xpose.msra.mxu0 %v524_v8  ;;  %v1103_v16 = vld [vmem:[%s1309_s30 + $0x28] sm:$0xff]   ;;  %v811_v18 = vld [vmem:[%s1460_s10] sm:$0x7]  ;;  %v1105_v22 = vld [vmem:[%s1309_s30 + $0x18] sm:$0xff]   ;;  %vm817_vm8 = vcmask 39936   ;;  %s1181_s15 = smov [#allocation2]  }
  0x1a   : > { %999 = vmatprep.subr.bf16.mxu0 %v1177_v0  ;;  %v518_v19 = vsel %vm492_vm1, %v1103_v16, 0  ;;  %v1104_v20 = vld [vmem:[%s1309_s30 + $0x20] sm:$0xff]   ;;  %v512_v23 = vsel %vm492_vm1, %v1105_v22, 0  ;;  %v1106_v24 = vld [vmem:[%s1309_s30 + $0x10] sm:$0xff]   ;;  %v1107_v26 = vld [vmem:[%s1309_s30 + $0x8] sm:$0xff]   ;;  %s1119_s16 = sshll.u32 %s1181_s15, 4  ;;  %s1120_s16 = int_to_ptr.vmem [resolvable:$false] %s1119_s16 }
  0x1b   : > { %426 = vperm.xlu0 %1099, %v411_v4   ;;  %416 = vperm.xlu1 %1100, %v409_v5   ;;  %v515_v21 = vsel %vm492_vm1, %v1104_v20, 0  ;;  %v509_v25 = vsel %vm492_vm1, %v1106_v24, 0  ;;  %v506_v27 = vsel %vm492_vm1, %v1107_v26, 0  ;;  %v1108_v28 = vld [vmem:[%s1309_s30] sm:$0xff]   ;;  %v1110_v31 = vld [vmem:[%s1451_s1 + $0x8] sm:$0xff]   ;;  %s378_s30 = sand.u32 1, %s1167_s18  }
  0x1c   : > { %v503_v29 = vsel %vm492_vm1, %v1108_v28, 0  ;;  %v1109_v30 = vld [vmem:[%s1451_s1] sm:$0xff]   ;;  %v1111_v32 = vld [vmem:[%s1451_s1 + $0x10] ss:$0 sps:$4 sm:$0xff]   ;;  %s945_s24 = sshll.u32 %s378_s30, 2  ;;  %s869_s26 = scalar_lea.sflag [#allocation3], %s378_s30 }
  0x1d   : > { %v1112_v33 = vld [vmem:[%s1453_s3] sm:$0xff]   ;;  %v1113_v2 = vld [vmem:[%s1453_s3 + $0x8] ss:$0 sps:$4 sm:$0x33]   ;;  %s380_s29 = scalar_lea.vmem [#allocation2], %s945_s24  ;;  %s1121_s22 = scalar_lea.vmem %s1120_s16, 128 }
  0x1e   : > { %1031 = vmatprep.mubr.msk.bf16.mxu1 %vm619_vm2, %v1112_v33  ;;  %s882_s12 = sshll.u32 %s380_s29, 4  ;;  %s1411_s12 = int_to_ptr.vmem [resolvable:$true] %s882_s12 }
  0x1f   : > { %421 = vperm.xlu0 %1099, %v410_v9   ;;  %608 = vperm.xlu1 %1100, %v595_v7   ;;  %s1115_s21 = scalar_lea.vmem %s1411_s12, 64  ;;  %p1122_p0 = scmp.lt.s32.totalorder %s1411_s12, %s1120_s16 }
  0x20   : > { %p1116_p11 = scmp.ne.s32.totalorder %s1411_s12, %s1115_s21  ;;  %p1123_p1 = scmp.lt.s32.totalorder %s1121_s22, %s1115_s21 }
  0x21   : > { %1000 = vmatpush3.bf16.xpose.msra.mxu0 %v521_v13 }
  0x22   : > { %1001 = vmatprep.subr.bf16.mxu0 %v1177_v0  ;;  %p1117_p12 = pnand %p1116_p11, %p1280_p5  ;;  %p1124_p2 = por %p1123_p1, %p1122_p0 }
  0x23   : > { %598 = vperm.xlu0 %1099, %v593_v11   ;;  %603 = vperm.xlu1 %1100, %v594_v12  }
  0x24   : > { %p1118_p13 = pneg %p1117_p12 }
  0x26   : > { %p1125_p3 = pnand %p1124_p2, %p1118_p13 }
  0x27   : > { %689 = vperm.xlu0 %1099, %v685_v14   ;;  %694 = vperm.xlu1 %1100, %v686_v15  }
  0x29   : > { %1002 = vmatpush3.bf16.xpose.msra.mxu0 %v518_v19  ;;  %v1114_v19 = vld [vmem:[%s1455_s5] sm:$0x1f]  }
  0x2a   : > { %1003 = vmatprep.subr.bf16.mxu0 %v1177_v0 }
  0x2b   : > { %757 = vperm.xlu0 %1099, %v754_v17   ;;  %814 = vperm.xlu1 %1100, %v811_v18  }
  0x31   : > { %1004 = vmatpush3.bf16.xpose.msra.mxu0 %v515_v21 }
  0x32   : > { %1005 = vmatprep.subr.bf16.mxu0 %v1177_v0 }
  0x39   : > { %1006 = vmatpush3.bf16.xpose.msra.mxu0 %v512_v23 }
  0x3a   : > { %1007 = vmatprep.subr.bf16.mxu0 %v1177_v0 }
  0x41   : > { %1008 = vmatpush3.bf16.xpose.msra.mxu0 %v509_v25 }
  0x42   : > { %1009 = vmatprep.subr.bf16.mxu0 %v1177_v0 }
  0x49   : > { %1010 = vmatpush3.bf16.xpose.msra.mxu0 %v506_v27 }
  0x4a   : > { %1011 = vmatprep.subr.bf16.mxu0 %v1177_v0 }
  0x51   : > { %1012 = vmatpush3.bf16.xpose.msra.mxu0 %v503_v29 }
  0x58   : > { %1014 = vmatmul.mubr.msk.bf16.vlgmr.msra.gmra.mxu0 %vm492_vm1, %v1109_v30 }
  0x59   : > { %1017 = vmatprep.mubr.msk.bf16.mxu0 %vm1178_vm0, %v1177_v0 }
  0x60   : > { %1018 = vmatmul.mubr.msk.bf16.gmra.mxu0 %vm492_vm1, %v1110_v31 }
  0x61   : > { %1021 = vmatprep.mubr.msk.bf16.mxu0 %vm1178_vm0, %v1177_v0 }
  0x68   : > { %1022 = vmatmul.mubr.msk.bf16.gmra.mxu0 %vm492_vm1, %v1111_v32  ;;  %v753_v32 = vld [vmem:[%s1457_s7] sm:$0x7] }
  0x92   : > { %v437_v36 = vpop.permute.xlu0 %436  ;;  %v432_v42 = vpop.permute.xlu1 %431 }
  0x96   : > { %v427_v40 = vpop.permute.xlu0 %426  ;;  %v417_v50 = vpop.permute.xlu1 %416 }
  0x9a   : > { %v422_v46 = vpop.permute.xlu0 %421  ;;  %v609_v3 = vpop.permute.xlu1 %608 }
  0x9e   : > { %v599_v8 = vpop.permute.xlu0 %598  ;;  %v604_v12 = vpop.permute.xlu1 %603 }
  0xa2   : > { %v690_v21 = vpop.permute.xlu0 %689  ;;  %v695_v24 = vpop.permute.xlu1 %694 }
  0xa6   : > { %v758_v33 = vpop.permute.xlu0 %757 }
 0x118   : > { %v560_v34 = vpop.f32.mrf.mxu0 }
 0x119   : > { %v561_v56 = vadd.f32 %v560_v34, %v417_v50 }
 0x11a   : > { %v1015_v35 = vpop.f32.mrf.mxu0 }
 0x11b   : > { %v582_v63 = vmax.f32 %v561_v56, 0.0 }
 0x11c   : > { %v563_v37 = vpop.f32.mrf.mxu0 }
 0x11d   : > { %v564_v52 = vadd.f32 %v563_v37, %v422_v46 }
 0x11e   : > { %v1016_v38 = vpop.f32.mrf.mxu0 }
 0x11f   : > { %v583_v60 = vmax.f32 %v564_v52, 0.0 }
 0x120   : > { %v568_v39 = vpop.f32.mrf.mxu0 }
 0x121   : > { %v569_v48 = vadd.f32 %v568_v39, %v427_v40  ;;  %v587_v1 = vpack.c.bf16 %v583_v60, %v582_v63 }
 0x122   : > { %v1019_v41 = vpop.f32.mrf.mxu0 }
 0x123   : > { %v584_v57 = vmax.f32 %v569_v48, 0.0 }
 0x124   : > { %v571_v43 = vpop.f32.mrf.mxu0 }
 0x125   : > { %v572_v45 = vadd.f32 %v571_v43, %v432_v42 }
 0x126   : > { %v1020_v44 = vpop.f32.mrf.mxu0 }
 0x127   : > { %v585_v53 = vmax.f32 %v572_v45, 0.0  ;;  %v815_v45 = vpop.permute.xlu1 %814 }
 0x128   : > { %v576_v47 = vpop.f32.mrf.mxu0 }
 0x129   : > { %v577_v49 = vadd.f32 %v576_v47, %v437_v36  ;;  %v588_v61 = vpack.c.bf16 %v585_v53, %v584_v57  ;;  %v1180_v36 = vmov 65535  }
 0x12a   : > { %v1023_v51 = vpop.f32.mrf.mxu0  ;;  %v822_v37 = vsel %vm705_vm4, 4294967295, %v1180_v36 }
 0x12b   : > { %v586_v54 = vmax.f32 %v577_v49, 0.0  ;;  %v823_v40 = vsel %vm821_vm7, %v822_v37, 0 }
 0x12c   : > { %v579_v55 = vpop.f32.mrf.mxu0 }
 0x12d   : > { %v589_v58 = vpack.c.bf16 %v586_v54, %v586_v54 }
 0x12e   : > { %v1024_v59 = vpop.f32.mrf.mxu0 }
 0x12f   : > { %1055 = vmatprep.subr.msk.bf16.mxu1 %vm626_vm3, %v589_v58  ;;  %v628_v62 = vsel %vm626_vm3, %v589_v58, 0 }
 0x130   : > { %1026 = vmatpush3.bf16.msra.mxu1 %v628_v62 }
 0x131   : > { %1027 = vmatprep.subr.bf16.mxu1 %v588_v61 }
 0x134   : > { %1028 = vmatpush3.bf16.msra.mxu1 %v588_v61 }
 0x135   : > { %1029 = vmatprep.subr.bf16.mxu1 %v587_v1 }
 0x138   : > { %1030 = vmatpush3.bf16.msra.mxu1 %v587_v1 }
 0x139   : > { %1035 = vmatprep.subr.bf16.mxu1 %v1177_v0 }
 0x13b   : > { %1032 = vmatmul.mubr.msk.bf16.vlgmr.msra.gmra.mxu1 %vm619_vm2, %v1113_v2 }
 0x13c   : > { %1039 = vmatprep.mubr.msk.bf16.mxu1 %vm1178_vm0, %v1177_v0 }
 0x1fb   : > { %v1033_v4 = vpop.f32.mrf.mxu1 }
 0x1fc   : > { %v673_v5 = vadd.f32 %v1033_v4, %v609_v3 }
 0x1fd   : > { %v664_v6 = vpop.f32.mrf.mxu1 }
 0x1fe   : > { %v680_v7 = vmax.f32 %v673_v5, 0.0  ;;  %v665_v11 = vadd.f32 %v664_v6, %v599_v8 }
 0x1ff   : > { %v1034_v9 = vpop.f32.mrf.mxu1 }
 0x200   : > { %v682_v10 = vpack.c.bf16 %v680_v7, %v680_v7  ;;  %v678_v16 = vmax.f32 %v665_v11, 0.0 }
 0x201   : > { %v667_v13 = vpop.f32.mrf.mxu1 }
 0x202   : > { %v668_v14 = vadd.f32 %v667_v13, %v604_v12  ;;  %v707_v15 = vsel %vm705_vm4, %v682_v10, 0 }
 0x203   : > { %1036 = vmatpush3.bf16.msra.mxu1 %v707_v15 }
 0x204   : > { %v679_v17 = vmax.f32 %v668_v14, 0.0  ;;  %1037 = vmatprep.subr.bf16.mxu1 %v1177_v0 }
 0x206   : > { %v681_v18 = vpack.c.bf16 %v679_v17, %v678_v16 }
 0x208   : > { %1038 = vmatpush3.bf16.msra.mxu1 %v681_v18 }
 0x209   : > { %1043 = vmatprep.subr.bf16.mxu1 %v1177_v0 }
 0x20b   : > { %1040 = vmatmul.mubr.msk.bf16.vlgmr.msra.gmra.mxu1 %vm492_vm1, %v1114_v19 }
 0x20c   : > { %1045 = vmatprep.mubr.msk.bf16.mxu1 %vm1178_vm0, %v1177_v0 }
 0x2cb   : > { %v743_v20 = vpop.f32.mrf.mxu1 }
 0x2cc   : > { %v744_v23 = vadd.f32 %v743_v20, %v690_v21 }
 0x2cd   : > { %v1041_v22 = vpop.f32.mrf.mxu1 }
 0x2ce   : > { %v750_v28 = vmax.f32 %v744_v23, 0.0 }
 0x2cf   : > { %v746_v25 = vpop.f32.mrf.mxu1 }
 0x2d0   : > { %v747_v26 = vadd.f32 %v746_v25, %v695_v24 }
 0x2d1   : > { %v1042_v27 = vpop.f32.mrf.mxu1 }
 0x2d2   : > { %v751_v29 = vmax.f32 %v747_v26, 0.0 }
 0x2d4   : > { %v752_v30 = vpack.c.bf16 %v751_v29, %v750_v28 }
 0x2d6   : > { %v766_v31 = vsel %vm764_vm5, %v752_v30, 0 }
 0x2d7   : > { %1044 = vmatpush3.bf16.msra.mxu1 %v766_v31 }
 0x2d8   : > { %1049 = vmatprep.subr.bf16.mxu1 %v1177_v0 }
 0x2da   : > { %1046 = vmatmul.mubr.msk.bf16.vlgmr.msra.gmra.mxu1 %vm760_vm6, %v753_v32 }
 0x2db   : > { %1051 = vmatprep.mubr.msk.bf16.mxu1 %vm1178_vm0, %v1177_v0  ;;  %v810_v0 = vld [vmem:[%s1459_s9] sm:$0x3] }
 0x39a   : > { %v802_v34 = vpop.f32.mrf.mxu1 }
 0x39b   : > { %v803_v35 = vadd.f32 %v802_v34, %v758_v33 }
 0x39c   : > { %v1047_v38 = vpop.f32.mrf.mxu1 }
 0x39d   : > { %v808_v39 = vmax.f32 %v803_v35, 0.0 }
 0x39e   : > { %v805_v41 = vpop.f32.mrf.mxu1 }
 0x39f   : > { %v809_v42 = vpack.c.bf16 %v808_v39, %v808_v39 }
 0x3a0   : > { %v1048_v43 = vpop.f32.mrf.mxu1 }
 0x3a1   : > { %v825_v44 = vand.u32 %v823_v40, %v809_v42 }
 0x3a3   : > { %1050 = vmatpush3.bf16.msra.mxu1 %v825_v44 }
 0x3a6   : > { %1052 = vmatmul.mubr.msk.bf16.vlgmr.msra.gmra.mxu1 %vm817_vm8, %v810_v0 }
 0x466   : > { %v861_v46 = vpop.f32.mrf.mxu1 }
 0x467   : > { %v862_v47 = vadd.f32 %v861_v46, %v815_v45 }
 0x468   : > { %v1053_v48 = vpop.f32.mrf.mxu1 }
 0x469   : > { %867 = vst [vmem:[%s380_s29] sm:$0x7] %v862_v47 }
 0x46a   : > { %v864_v49 = vpop.f32.mrf.mxu1 }
 0x46b   : > { %1128 = shalt.err (!%p1125_p3)
}
 0x46c   : > { %s1129_s24 = scalar_lea.hbm %s1409_s19, 64  ;;  %s1133_s29 = scalar_lea.hbm %s1461_s11, 128 }
 0x46d   : > { %p1130_p4 = scmp.ne.s32.totalorder %s1409_s19, %s1129_s24  ;;  %p1134_p9 = scmp.lt.s32.totalorder %s1409_s19, %s1461_s11 }
 0x46e   : > { %p1135_p10 = scmp.lt.s32.totalorder %s1133_s29, %s1129_s24 }
 0x46f   : > { %p1131_p7 = pnand %p1130_p4, %p1280_p5 }
 0x470   : > { %p1136_p11 = por %p1135_p10, %p1134_p9 }
 0x471   : > { %p1132_p8 = pneg %p1131_p7 }
 0x473   : > { %p1137_p12 = pnand %p1136_p11, %p1132_p8 }
 0x475   : > { %1140 = shalt.err (!%p1137_p12)
}
 0x476   : > { %1056 = dma.vmem_to_hbm [thread:$0]  (%p1280_p5), %s1411_s12, 64, %s1409_s19, %s869_s26   ;;  %v1054_v50 = vpop.f32.mrf.mxu1 }
 0x477 PF: > { %p1062_p13 = scmp.ge.s32.totalorder %s1175_s20, 2  ;;  %s894_s21 = sand.u32 1, %s1163_s17  }
 0x478   : > { %s895_s15 = scalar_lea.sflag [#allocation3], %s894_s21 }
 0x479   : > { %p1059_p0 = pnand %p1062_p13, %p1284_p6 }
 0x47b   : > { %p1060_p1 = pneg %p1059_p0 }
 0x47d   : > { %1158 = dma.done.wait (%p1060_p1), %s895_s15, 64  }
 0x47e   : > { %1160 = vsyncadd (%p1060_p1), %s895_s15, 4294967232  ;;  %s1467_s16 = sld [smem:[#allocation5_spill]]  ;;  %p21_p2 = scmp.ge.s32.totalorder %s1267_s23, 4  }
 0x47f   : > { %s1468_s19 = sld [smem:[#allocation6_spill]]  ;;  %s1469_s17 = smov %s1167_s18 }
 0x480   : > { %s1471_s20 = smov %s1267_s23  ;;  %23 = sbr.rel (!%p21_p2) target bundleno = 3 (0x3), region = 99 }
 0x484   : > { %s1470_s18 = smov %s1467_s16 }
 0x485   :  { %900 = vsyncpa [#allocation3], 1 }
 0x486   :  { %902 = vsyncpa [#allocation3 + $0x1], 1 }

</bundles_post_ra>
